<compile_context>
chip_gen: v5e
topology: v5e:2x2
jax: 0.10.0
libtpu: 0.0.40
codegen_flags: <defaults>
</compile_context>

<pallas_src>
import jax
import jax.numpy as jnp
from jax.experimental import pallas as pl
from jax.experimental.pallas import tpu as pltpu


# ----------------------------------------------------------------------------
# Fused kernel factory (all shapes static; loops are unrolled — intended for
# small B/S/K as in this text-classification encoder).
# ----------------------------------------------------------------------------
def _make_fused_kernel(B, S, layer_meta):
    """layer_meta: list of (O, C, K, Lin, Lout) per conv layer (static)."""
    n_layers = len(layer_meta)

    def kernel(ids_ref, emb_ref, *rest):
        # rest = (w1, b1, w2, b2, ..., out_ref, x_scratch)
        w_refs = rest[0:2 * n_layers:2]        # (O_i, K_i*C_i) bf16
        b_refs = rest[1:2 * n_layers:2]        # (O_i, 128)     f32
        out_ref = rest[2 * n_layers]           # (O_last, B)    f32
        x_scratch = rest[2 * n_layers + 1]     # (B*S, E)       f32

        # ---- Embedding gather: B*S dynamic-row loads from the VMEM table,
        #      lane-aligned stores into the scratch (row b*S+s <- table[id]).
        for b in range(B):
            for s in range(S):
                row = ids_ref[b, s]
                x_scratch[pl.ds(b * S + s, 1), :] = emb_ref[pl.ds(row, 1), :]

        # h layout:
        #   layer 0 input : (B*S, E)        -> per-batch blocks along SUBLANES
        #   layer i>0 in  : (C, B*Lin)      -> per-batch blocks along LANES
        h = x_scratch[...]

        # ---- Conv1d + ReLU stack: one whole-batch im2col matmul per layer ----
        for li, (O, C, K, Lin, Lout) in enumerate(layer_meta):
            if li == 0:
                # xcol[k*C + c, b*Lout + j] = x_scratch[b*S + c, j + k]
                xcol = jnp.concatenate(
                    [jnp.concatenate(
                        [h[b * S:(b + 1) * S, k:k + Lout] for b in range(B)],
                        axis=1)
                     for k in range(K)],
                    axis=0)
            else:
                # xcol[k*C + c, b*Lout + j] = h[c, b*Lin + j + k]
                xcol = jnp.concatenate(
                    [jnp.concatenate(
                        [h[:, b * Lin + k: b * Lin + k + Lout] for b in range(B)],
                        axis=1)
                     for k in range(K)],
                    axis=0)
            acc = jnp.dot(w_refs[li][...], xcol.astype(jnp.bfloat16),
                          preferred_element_type=jnp.float32)   # (O, B*Lout) f32
            # bias (lane-broadcast from column 0 of the slab) + ReLU in f32
            h = jnp.maximum(acc + b_refs[li][:, 0:1], 0.0)

        # ---- Global max pool over length (per batch block of lanes) ----
        L = layer_meta[-1][4]
        pooled = jnp.concatenate(
            [jnp.max(h[:, b * L:(b + 1) * L], axis=1, keepdims=True)
             for b in range(B)],
            axis=1)                                              # (O_last, B)
        out_ref[...] = pooled

    return kernel


# ----------------------------------------------------------------------------
# One-time parameter preprocessing (hoisted out of the forward path).
# ----------------------------------------------------------------------------
def prepare_params(params):
    layers = []
    for (w, b) in params["convs"]:
        O, C, K = w.shape
        # Conv1d: out[o, j] = sum_{c,k} w[o, c, k] * x[c, j + k]
        # flatten so W_flat[o, k*C + c] = w[o, c, k]  -> one matmul per layer.
        w_flat = jnp.transpose(w, (0, 2, 1)).reshape(O, K * C).astype(jnp.bfloat16)
        # Lane-dense f32 bias slab (kernel broadcasts from column 0).
        b_slab = jnp.asarray(
            jnp.broadcast_to(b.astype(jnp.float32)[:, None], (O, 128)))
        layers.append({"w_flat": w_flat, "b_slab": b_slab, "O": O, "C": C, "K": K})
    return {"embedding": params["embedding"].astype(jnp.float32), "layers": layers}


# ----------------------------------------------------------------------------
# Fused forward pass (single pallas_call, single grid step).
# ----------------------------------------------------------------------------
def cnn_forward(prepped, x_ids):
    B, S = x_ids.shape
    emb = prepped["embedding"]
    V, E = emb.shape

    layer_meta = []
    L = E
    for lyr in prepped["layers"]:
        O, C, K = lyr["O"], lyr["C"], lyr["K"]
        Lout = L - K + 1
        layer_meta.append((O, C, K, L, Lout))
        L = Lout
    o_last = layer_meta[-1][0]

    kernel = _make_fused_kernel(B, S, layer_meta)

    in_specs = [pl.BlockSpec((V, E), lambda i, ids: (0, 0))]     # embedding table
    args = [emb]
    for lyr, (O, C, K, Lin, Lout) in zip(prepped["layers"], layer_meta):
        in_specs.append(pl.BlockSpec((O, K * C), lambda i, ids: (0, 0)))
        in_specs.append(pl.BlockSpec((O, 128), lambda i, ids: (0, 0)))
        args += [lyr["w_flat"], lyr["b_slab"]]

    grid_spec = pltpu.PrefetchScalarGridSpec(
        num_scalar_prefetch=1,                  # token ids -> SMEM
        grid=(1,),                              # whole batch in one step
        in_specs=in_specs,
        out_specs=pl.BlockSpec((o_last, B), lambda i, ids: (0, 0)),
        scratch_shapes=[pltpu.VMEM((B * S, E), jnp.float32)],
    )
    out = pl.pallas_call(
        kernel,
        grid_spec=grid_spec,
        out_shape=jax.ShapeDtypeStruct((o_last, B), jnp.float32),
        compiler_params=pltpu.CompilerParams(
            dimension_semantics=("arbitrary",)),
    )(x_ids.astype(jnp.int32), *args)
    return out.T                                # (B, o_last); tiny, free


# ----------------------------------------------------------------------------
# Parameter init (PyTorch-style) and pure-JAX f32 reference for validation.
# ----------------------------------------------------------------------------
def init_cnn_params(key, num_embeddings, embedding_dim, sequence_length,
                    num_filters, kernel_size, num_conv_layers):
    if isinstance(kernel_size, list):
        assert len(kernel_size) == num_conv_layers
        ks = kernel_size
    else:
        ks = [kernel_size] * num_conv_layers
    keys = jax.random.split(key, 1 + 2 * num_conv_layers)
    params = {
        "embedding": jax.random.normal(
            keys[0], (num_embeddings + 1, embedding_dim), jnp.float32) * 0.1,
        "convs": [],
    }
    in_ch = sequence_length
    for i in range(num_conv_layers):
        out_ch = num_filters * (i + 1)
        bound = 1.0 / jnp.sqrt(in_ch * ks[i])
        w = jax.random.uniform(keys[1 + 2 * i], (out_ch, in_ch, ks[i]),
                               jnp.float32, -bound, bound)
        b = jax.random.uniform(keys[2 + 2 * i], (out_ch,),
                               jnp.float32, -bound, bound)
        params["convs"].append((w, b))
        in_ch = out_ch
    return params


def cnn_reference(params, x_ids):
    emb = jnp.take(params["embedding"], x_ids, axis=0)   # (B, S, E)
    h = emb
    for (w, b) in params["convs"]:
        K = w.shape[2]
        Lout = h.shape[2] - K + 1
        out = jnp.zeros((h.shape[0], w.shape[0], Lout), jnp.float32)
        for k in range(K):
            out = out + jnp.einsum("oc,bcl->bol", w[:, :, k], h[:, :, k:k + Lout])
        h = jnp.maximum(out + b[None, :, None], 0.0)
    return jnp.max(h, axis=-1)


if __name__ == "__main__":
    num_embeddings = 50
    embedding_dim = 32
    sequence_length = 8
    num_filters = 4
    kernel_size = 3
    num_conv_layers = 2
    batch = 2

    root = jax.random.PRNGKey(0)
    k_param, k_data = jax.random.split(root)
    params = init_cnn_params(k_param, num_embeddings, embedding_dim,
                             sequence_length, num_filters, kernel_size,
                             num_conv_layers)
    prepped = prepare_params(params)
    x_ids = jax.random.randint(k_data, (batch, sequence_length), 0,
                               num_embeddings + 1, dtype=jnp.int32)

    fwd = jax.jit(lambda ids: cnn_forward(prepped, ids))
    out = jax.block_until_ready(fwd(x_ids))

    ref = cnn_reference(params, x_ids)
    assert out.shape == (batch, num_filters * num_conv_layers), out.shape
    # Kernel uses bf16 MXU operands with f32 accumulation; reference is pure
    # f32 -> tolerance sized for bf16 operand rounding.
    assert jnp.allclose(out, ref, atol=2e-2, rtol=2e-2), (out, ref)

    print("KERNEL_OK")
</pallas_src>

<mosaic_0001>
module attributes {stable_mosaic.version = 11 : i64} {
  func.func @kernel(%arg0: i32, %arg1: memref<2x8xi32, #tpu.memory_space<smem>>, %arg2: memref<51x32xf32, #tpu.memory_space<vmem>>, %arg3: memref<4x24xbf16, #tpu.memory_space<vmem>>, %arg4: memref<4x128xf32, #tpu.memory_space<vmem>>, %arg5: memref<8x12xbf16, #tpu.memory_space<vmem>>, %arg6: memref<8x128xf32, #tpu.memory_space<vmem>>, %arg7: memref<8x2xf32, #tpu.memory_space<vmem>>, %arg8: memref<16x32xf32, #tpu.memory_space<vmem>>) attributes {dimension_semantics = [#tpu.dimension_semantics<arbitrary>], iteration_bounds = array<i64: 1>, scalar_prefetch = 1 : i64, scratch_operands = 1 : i64, tpu.core_type = #tpu.core_type<tc>, window_params = [{pipeline_mode = #tpu.pipeline_mode<synchronous>, transform_indices = @transform_0, window_bounds = array<i64: 51, 32>}, {pipeline_mode = #tpu.pipeline_mode<synchronous>, transform_indices = @transform_1, window_bounds = array<i64: 4, 24>}, {pipeline_mode = #tpu.pipeline_mode<synchronous>, transform_indices = @transform_2, window_bounds = array<i64: 4, 128>}, {pipeline_mode = #tpu.pipeline_mode<synchronous>, transform_indices = @transform_3, window_bounds = array<i64: 8, 12>}, {pipeline_mode = #tpu.pipeline_mode<synchronous>, transform_indices = @transform_4, window_bounds = array<i64: 8, 128>}, {pipeline_mode = #tpu.pipeline_mode<synchronous>, transform_indices = @transform_5, window_bounds = array<i64: 8, 2>}]} {
    %c0 = arith.constant 0 : index
    %c0_0 = arith.constant 0 : index
    %0 = memref.load %arg1[%c0, %c0_0] : memref<2x8xi32, #tpu.memory_space<smem>>
    %1 = arith.index_cast %0 : i32 to index
    %c0_1 = arith.constant 0 : index
    %2 = vector.load %arg2[%1, %c0_1] : memref<51x32xf32, #tpu.memory_space<vmem>>, vector<1x32xf32>
    %c0_2 = arith.constant 0 : index
    %c0_3 = arith.constant 0 : index
    %3 = vector.load %arg8[%c0_2, %c0_3] : memref<16x32xf32, #tpu.memory_space<vmem>>, vector<1x32xf32>
    tpu.vector_store %arg8[%c0_2, %c0_3], %2 {strides = array<i32>} : memref<16x32xf32, #tpu.memory_space<vmem>>, vector<1x32xf32>,
    %c0_4 = arith.constant 0 : index
    %c1 = arith.constant 1 : index
    %4 = memref.load %arg1[%c0_4, %c1] : memref<2x8xi32, #tpu.memory_space<smem>>
    %5 = arith.index_cast %4 : i32 to index
    %c0_5 = arith.constant 0 : index
    %6 = vector.load %arg2[%5, %c0_5] : memref<51x32xf32, #tpu.memory_space<vmem>>, vector<1x32xf32>
    %c1_6 = arith.constant 1 : index
    %c0_7 = arith.constant 0 : index
    %7 = vector.load %arg8[%c1_6, %c0_7] : memref<16x32xf32, #tpu.memory_space<vmem>>, vector<1x32xf32>
    tpu.vector_store %arg8[%c1_6, %c0_7], %6 {strides = array<i32>} : memref<16x32xf32, #tpu.memory_space<vmem>>, vector<1x32xf32>,
    %c0_8 = arith.constant 0 : index
    %c2 = arith.constant 2 : index
    %8 = memref.load %arg1[%c0_8, %c2] : memref<2x8xi32, #tpu.memory_space<smem>>
    %9 = arith.index_cast %8 : i32 to index
    %c0_9 = arith.constant 0 : index
    %10 = vector.load %arg2[%9, %c0_9] : memref<51x32xf32, #tpu.memory_space<vmem>>, vector<1x32xf32>
    %c2_10 = arith.constant 2 : index
    %c0_11 = arith.constant 0 : index
    %11 = vector.load %arg8[%c2_10, %c0_11] : memref<16x32xf32, #tpu.memory_space<vmem>>, vector<1x32xf32>
    tpu.vector_store %arg8[%c2_10, %c0_11], %10 {strides = array<i32>} : memref<16x32xf32, #tpu.memory_space<vmem>>, vector<1x32xf32>,
    %c0_12 = arith.constant 0 : index
    %c3 = arith.constant 3 : index
    %12 = memref.load %arg1[%c0_12, %c3] : memref<2x8xi32, #tpu.memory_space<smem>>
    %13 = arith.index_cast %12 : i32 to index
    %c0_13 = arith.constant 0 : index
    %14 = vector.load %arg2[%13, %c0_13] : memref<51x32xf32, #tpu.memory_space<vmem>>, vector<1x32xf32>
    %c3_14 = arith.constant 3 : index
    %c0_15 = arith.constant 0 : index
    %15 = vector.load %arg8[%c3_14, %c0_15] : memref<16x32xf32, #tpu.memory_space<vmem>>, vector<1x32xf32>
    tpu.vector_store %arg8[%c3_14, %c0_15], %14 {strides = array<i32>} : memref<16x32xf32, #tpu.memory_space<vmem>>, vector<1x32xf32>,
    %c0_16 = arith.constant 0 : index
    %c4 = arith.constant 4 : index
    %16 = memref.load %arg1[%c0_16, %c4] : memref<2x8xi32, #tpu.memory_space<smem>>
    %17 = arith.index_cast %16 : i32 to index
    %c0_17 = arith.constant 0 : index
    %18 = vector.load %arg2[%17, %c0_17] : memref<51x32xf32, #tpu.memory_space<vmem>>, vector<1x32xf32>
    %c4_18 = arith.constant 4 : index
    %c0_19 = arith.constant 0 : index
    %19 = vector.load %arg8[%c4_18, %c0_19] : memref<16x32xf32, #tpu.memory_space<vmem>>, vector<1x32xf32>
    tpu.vector_store %arg8[%c4_18, %c0_19], %18 {strides = array<i32>} : memref<16x32xf32, #tpu.memory_space<vmem>>, vector<1x32xf32>,
    %c0_20 = arith.constant 0 : index
    %c5 = arith.constant 5 : index
    %20 = memref.load %arg1[%c0_20, %c5] : memref<2x8xi32, #tpu.memory_space<smem>>
    %21 = arith.index_cast %20 : i32 to index
    %c0_21 = arith.constant 0 : index
    %22 = vector.load %arg2[%21, %c0_21] : memref<51x32xf32, #tpu.memory_space<vmem>>, vector<1x32xf32>
    %c5_22 = arith.constant 5 : index
    %c0_23 = arith.constant 0 : index
    %23 = vector.load %arg8[%c5_22, %c0_23] : memref<16x32xf32, #tpu.memory_space<vmem>>, vector<1x32xf32>
    tpu.vector_store %arg8[%c5_22, %c0_23], %22 {strides = array<i32>} : memref<16x32xf32, #tpu.memory_space<vmem>>, vector<1x32xf32>,
    %c0_24 = arith.constant 0 : index
    %c6 = arith.constant 6 : index
    %24 = memref.load %arg1[%c0_24, %c6] : memref<2x8xi32, #tpu.memory_space<smem>>
    %25 = arith.index_cast %24 : i32 to index
    %c0_25 = arith.constant 0 : index
    %26 = vector.load %arg2[%25, %c0_25] : memref<51x32xf32, #tpu.memory_space<vmem>>, vector<1x32xf32>
    %c6_26 = arith.constant 6 : index
    %c0_27 = arith.constant 0 : index
    %27 = vector.load %arg8[%c6_26, %c0_27] : memref<16x32xf32, #tpu.memory_space<vmem>>, vector<1x32xf32>
    tpu.vector_store %arg8[%c6_26, %c0_27], %26 {strides = array<i32>} : memref<16x32xf32, #tpu.memory_space<vmem>>, vector<1x32xf32>,
    %c0_28 = arith.constant 0 : index
    %c7 = arith.constant 7 : index
    %28 = memref.load %arg1[%c0_28, %c7] : memref<2x8xi32, #tpu.memory_space<smem>>
    %29 = arith.index_cast %28 : i32 to index
    %c0_29 = arith.constant 0 : index
    %30 = vector.load %arg2[%29, %c0_29] : memref<51x32xf32, #tpu.memory_space<vmem>>, vector<1x32xf32>
    %c7_30 = arith.constant 7 : index
    %c0_31 = arith.constant 0 : index
    %31 = vector.load %arg8[%c7_30, %c0_31] : memref<16x32xf32, #tpu.memory_space<vmem>>, vector<1x32xf32>
    tpu.vector_store %arg8[%c7_30, %c0_31], %30 {strides = array<i32>} : memref<16x32xf32, #tpu.memory_space<vmem>>, vector<1x32xf32>,
    %c1_32 = arith.constant 1 : index
    %c0_33 = arith.constant 0 : index
    %32 = memref.load %arg1[%c1_32, %c0_33] : memref<2x8xi32, #tpu.memory_space<smem>>
    %33 = arith.index_cast %32 : i32 to index
    %c0_34 = arith.constant 0 : index
    %34 = vector.load %arg2[%33, %c0_34] : memref<51x32xf32, #tpu.memory_space<vmem>>, vector<1x32xf32>
    %c8 = arith.constant 8 : index
    %c0_35 = arith.constant 0 : index
    %35 = vector.load %arg8[%c8, %c0_35] : memref<16x32xf32, #tpu.memory_space<vmem>>, vector<1x32xf32>
    tpu.vector_store %arg8[%c8, %c0_35], %34 {strides = array<i32>} : memref<16x32xf32, #tpu.memory_space<vmem>>, vector<1x32xf32>,
    %c1_36 = arith.constant 1 : index
    %c1_37 = arith.constant 1 : index
    %36 = memref.load %arg1[%c1_36, %c1_37] : memref<2x8xi32, #tpu.memory_space<smem>>
    %37 = arith.index_cast %36 : i32 to index
    %c0_38 = arith.constant 0 : index
    %38 = vector.load %arg2[%37, %c0_38] : memref<51x32xf32, #tpu.memory_space<vmem>>, vector<1x32xf32>
    %c9 = arith.constant 9 : index
    %c0_39 = arith.constant 0 : index
    %39 = vector.load %arg8[%c9, %c0_39] : memref<16x32xf32, #tpu.memory_space<vmem>>, vector<1x32xf32>
    tpu.vector_store %arg8[%c9, %c0_39], %38 {strides = array<i32>} : memref<16x32xf32, #tpu.memory_space<vmem>>, vector<1x32xf32>,
    %c1_40 = arith.constant 1 : index
    %c2_41 = arith.constant 2 : index
    %40 = memref.load %arg1[%c1_40, %c2_41] : memref<2x8xi32, #tpu.memory_space<smem>>
    %41 = arith.index_cast %40 : i32 to index
    %c0_42 = arith.constant 0 : index
    %42 = vector.load %arg2[%41, %c0_42] : memref<51x32xf32, #tpu.memory_space<vmem>>, vector<1x32xf32>
    %c10 = arith.constant 10 : index
    %c0_43 = arith.constant 0 : index
    %43 = vector.load %arg8[%c10, %c0_43] : memref<16x32xf32, #tpu.memory_space<vmem>>, vector<1x32xf32>
    tpu.vector_store %arg8[%c10, %c0_43], %42 {strides = array<i32>} : memref<16x32xf32, #tpu.memory_space<vmem>>, vector<1x32xf32>,
    %c1_44 = arith.constant 1 : index
    %c3_45 = arith.constant 3 : index
    %44 = memref.load %arg1[%c1_44, %c3_45] : memref<2x8xi32, #tpu.memory_space<smem>>
    %45 = arith.index_cast %44 : i32 to index
    %c0_46 = arith.constant 0 : index
    %46 = vector.load %arg2[%45, %c0_46] : memref<51x32xf32, #tpu.memory_space<vmem>>, vector<1x32xf32>
    %c11 = arith.constant 11 : index
    %c0_47 = arith.constant 0 : index
    %47 = vector.load %arg8[%c11, %c0_47] : memref<16x32xf32, #tpu.memory_space<vmem>>, vector<1x32xf32>
    tpu.vector_store %arg8[%c11, %c0_47], %46 {strides = array<i32>} : memref<16x32xf32, #tpu.memory_space<vmem>>, vector<1x32xf32>,
    %c1_48 = arith.constant 1 : index
    %c4_49 = arith.constant 4 : index
    %48 = memref.load %arg1[%c1_48, %c4_49] : memref<2x8xi32, #tpu.memory_space<smem>>
    %49 = arith.index_cast %48 : i32 to index
    %c0_50 = arith.constant 0 : index
    %50 = vector.load %arg2[%49, %c0_50] : memref<51x32xf32, #tpu.memory_space<vmem>>, vector<1x32xf32>
    %c12 = arith.constant 12 : index
    %c0_51 = arith.constant 0 : index
    %51 = vector.load %arg8[%c12, %c0_51] : memref<16x32xf32, #tpu.memory_space<vmem>>, vector<1x32xf32>
    tpu.vector_store %arg8[%c12, %c0_51], %50 {strides = array<i32>} : memref<16x32xf32, #tpu.memory_space<vmem>>, vector<1x32xf32>,
    %c1_52 = arith.constant 1 : index
    %c5_53 = arith.constant 5 : index
    %52 = memref.load %arg1[%c1_52, %c5_53] : memref<2x8xi32, #tpu.memory_space<smem>>
    %53 = arith.index_cast %52 : i32 to index
    %c0_54 = arith.constant 0 : index
    %54 = vector.load %arg2[%53, %c0_54] : memref<51x32xf32, #tpu.memory_space<vmem>>, vector<1x32xf32>
    %c13 = arith.constant 13 : index
    %c0_55 = arith.constant 0 : index
    %55 = vector.load %arg8[%c13, %c0_55] : memref<16x32xf32, #tpu.memory_space<vmem>>, vector<1x32xf32>
    tpu.vector_store %arg8[%c13, %c0_55], %54 {strides = array<i32>} : memref<16x32xf32, #tpu.memory_space<vmem>>, vector<1x32xf32>,
    %c1_56 = arith.constant 1 : index
    %c6_57 = arith.constant 6 : index
    %56 = memref.load %arg1[%c1_56, %c6_57] : memref<2x8xi32, #tpu.memory_space<smem>>
    %57 = arith.index_cast %56 : i32 to index
    %c0_58 = arith.constant 0 : index
    %58 = vector.load %arg2[%57, %c0_58] : memref<51x32xf32, #tpu.memory_space<vmem>>, vector<1x32xf32>
    %c14 = arith.constant 14 : index
    %c0_59 = arith.constant 0 : index
    %59 = vector.load %arg8[%c14, %c0_59] : memref<16x32xf32, #tpu.memory_space<vmem>>, vector<1x32xf32>
    tpu.vector_store %arg8[%c14, %c0_59], %58 {strides = array<i32>} : memref<16x32xf32, #tpu.memory_space<vmem>>, vector<1x32xf32>,
    %c1_60 = arith.constant 1 : index
    %c7_61 = arith.constant 7 : index
    %60 = memref.load %arg1[%c1_60, %c7_61] : memref<2x8xi32, #tpu.memory_space<smem>>
    %61 = arith.index_cast %60 : i32 to index
    %c0_62 = arith.constant 0 : index
    %62 = vector.load %arg2[%61, %c0_62] : memref<51x32xf32, #tpu.memory_space<vmem>>, vector<1x32xf32>
    %c15 = arith.constant 15 : index
    %c0_63 = arith.constant 0 : index
    %63 = vector.load %arg8[%c15, %c0_63] : memref<16x32xf32, #tpu.memory_space<vmem>>, vector<1x32xf32>
    tpu.vector_store %arg8[%c15, %c0_63], %62 {strides = array<i32>} : memref<16x32xf32, #tpu.memory_space<vmem>>, vector<1x32xf32>,
    %c0_64 = arith.constant 0 : index
    %c0_65 = arith.constant 0 : index
    %64 = vector.load %arg8[%c0_64, %c0_65] : memref<16x32xf32, #tpu.memory_space<vmem>>, vector<16x32xf32>
    %65 = vector.extract_strided_slice %64 {offsets = [0, 0], sizes = [8, 30], strides = [1, 1]} : vector<16x32xf32> to vector<8x30xf32>
    %66 = vector.extract_strided_slice %64 {offsets = [8, 0], sizes = [8, 30], strides = [1, 1]} : vector<16x32xf32> to vector<8x30xf32>
    %67 = tpu.concatenate %65, %66 in 1 : vector<8x30xf32>, vector<8x30xf32> -> vector<8x60xf32>
    %68 = vector.extract_strided_slice %64 {offsets = [0, 1], sizes = [8, 30], strides = [1, 1]} : vector<16x32xf32> to vector<8x30xf32>
    %69 = vector.extract_strided_slice %64 {offsets = [8, 1], sizes = [8, 30], strides = [1, 1]} : vector<16x32xf32> to vector<8x30xf32>
    %70 = tpu.concatenate %68, %69 in 1 : vector<8x30xf32>, vector<8x30xf32> -> vector<8x60xf32>
    %71 = vector.extract_strided_slice %64 {offsets = [0, 2], sizes = [8, 30], strides = [1, 1]} : vector<16x32xf32> to vector<8x30xf32>
    %72 = vector.extract_strided_slice %64 {offsets = [8, 2], sizes = [8, 30], strides = [1, 1]} : vector<16x32xf32> to vector<8x30xf32>
    %73 = tpu.concatenate %71, %72 in 1 : vector<8x30xf32>, vector<8x30xf32> -> vector<8x60xf32>
    %74 = tpu.concatenate %67, %70, %73 in 0 : vector<8x60xf32>, vector<8x60xf32>, vector<8x60xf32> -> vector<24x60xf32>
    %c0_66 = arith.constant 0 : index
    %c0_67 = arith.constant 0 : index
    %75 = vector.load %arg3[%c0_66, %c0_67] : memref<4x24xbf16, #tpu.memory_space<vmem>>, vector<4x24xbf16>
    %76 = arith.truncf %74 : vector<24x60xf32> to vector<24x60xbf16>
    %cst = arith.constant dense<0.000000e+00> : vector<4x60xf32>
    %77 = tpu.matmul %75, %76, %cst {dimension_numbers = #tpu.dot_dimension_numbers<[1], [0], [0], [1], [0, 0, 1, 1], [], []>} : vector<4x24xbf16>, vector<24x60xbf16>, vector<4x60xf32> -> vector<4x60xf32>
    %c0_68 = arith.constant 0 : index
    %c0_69 = arith.constant 0 : index
    %78 = vector.load %arg4[%c0_68, %c0_69] : memref<4x128xf32, #tpu.memory_space<vmem>>, vector<4x1xf32>
    %79 = vector.broadcast %78 : vector<4x1xf32> to vector<4x60xf32>
    %80 = arith.addf %77, %79 : vector<4x60xf32>
    %cst_70 = arith.constant 0.000000e+00 : f32
    %81 = vector.broadcast %cst_70 : f32 to vector<4x60xf32>
    %82 = arith.maximumf %80, %81 : vector<4x60xf32>
    %83 = vector.extract_strided_slice %82 {offsets = [0, 0], sizes = [4, 28], strides = [1, 1]} : vector<4x60xf32> to vector<4x28xf32>
    %84 = vector.extract_strided_slice %82 {offsets = [0, 30], sizes = [4, 28], strides = [1, 1]} : vector<4x60xf32> to vector<4x28xf32>
    %85 = tpu.concatenate %83, %84 in 1 : vector<4x28xf32>, vector<4x28xf32> -> vector<4x56xf32>
    %86 = vector.extract_strided_slice %82 {offsets = [0, 1], sizes = [4, 28], strides = [1, 1]} : vector<4x60xf32> to vector<4x28xf32>
    %87 = vector.extract_strided_slice %82 {offsets = [0, 31], sizes = [4, 28], strides = [1, 1]} : vector<4x60xf32> to vector<4x28xf32>
    %88 = tpu.concatenate %86, %87 in 1 : vector<4x28xf32>, vector<4x28xf32> -> vector<4x56xf32>
    %89 = vector.extract_strided_slice %82 {offsets = [0, 2], sizes = [4, 28], strides = [1, 1]} : vector<4x60xf32> to vector<4x28xf32>
    %90 = vector.extract_strided_slice %82 {offsets = [0, 32], sizes = [4, 28], strides = [1, 1]} : vector<4x60xf32> to vector<4x28xf32>
    %91 = tpu.concatenate %89, %90 in 1 : vector<4x28xf32>, vector<4x28xf32> -> vector<4x56xf32>
    %92 = tpu.concatenate %85, %88, %91 in 0 : vector<4x56xf32>, vector<4x56xf32>, vector<4x56xf32> -> vector<12x56xf32>
    %c0_71 = arith.constant 0 : index
    %c0_72 = arith.constant 0 : index
    %93 = vector.load %arg5[%c0_71, %c0_72] : memref<8x12xbf16, #tpu.memory_space<vmem>>, vector<8x12xbf16>
    %94 = arith.truncf %92 : vector<12x56xf32> to vector<12x56xbf16>
    %cst_73 = arith.constant dense<0.000000e+00> : vector<8x56xf32>
    %95 = tpu.matmul %93, %94, %cst_73 {dimension_numbers = #tpu.dot_dimension_numbers<[1], [0], [0], [1], [0, 0, 1, 1], [], []>} : vector<8x12xbf16>, vector<12x56xbf16>, vector<8x56xf32> -> vector<8x56xf32>
    %c0_74 = arith.constant 0 : index
    %c0_75 = arith.constant 0 : index
    %96 = vector.load %arg6[%c0_74, %c0_75] : memref<8x128xf32, #tpu.memory_space<vmem>>, vector<8x1xf32>
    %97 = vector.broadcast %96 : vector<8x1xf32> to vector<8x56xf32>
    %98 = arith.addf %95, %97 : vector<8x56xf32>
    %cst_76 = arith.constant 0.000000e+00 : f32
    %99 = vector.broadcast %cst_76 : f32 to vector<8x56xf32>
    %100 = arith.maximumf %98, %99 : vector<8x56xf32>
    %101 = vector.extract_strided_slice %100 {offsets = [0, 0], sizes = [8, 28], strides = [1, 1]} : vector<8x56xf32> to vector<8x28xf32>
    %cst_77 = arith.constant dense<0xFF800000> : vector<8xf32>
    %102 = vector.multi_reduction <maximumf>, %101, %cst_77 [1] : vector<8x28xf32> to vector<8xf32>
    %103 = vector.shape_cast %102 : vector<8xf32> to vector<8x1xf32>
    %104 = vector.extract_strided_slice %100 {offsets = [0, 28], sizes = [8, 28], strides = [1, 1]} : vector<8x56xf32> to vector<8x28xf32>
    %cst_78 = arith.constant dense<0xFF800000> : vector<8xf32>
    %105 = vector.multi_reduction <maximumf>, %104, %cst_78 [1] : vector<8x28xf32> to vector<8xf32>
    %106 = vector.shape_cast %105 : vector<8xf32> to vector<8x1xf32>
    %107 = tpu.concatenate %103, %106 in 1 : vector<8x1xf32>, vector<8x1xf32> -> vector<8x2xf32>
    %c0_79 = arith.constant 0 : index
    %c0_80 = arith.constant 0 : index
    %108 = vector.load %arg7[%c0_79, %c0_80] : memref<8x2xf32, #tpu.memory_space<vmem>>, vector<8x2xf32>
    tpu.vector_store %arg7[%c0_79, %c0_80], %107 {strides = array<i32>} : memref<8x2xf32, #tpu.memory_space<vmem>>, vector<8x2xf32>,
    return
  }
  func.func @transform_0(%arg0: i32, %arg1: memref<2x8xi32, #tpu.memory_space<smem>>) -> (i32, i32) {
    %c0_i32 = arith.constant 0 : i32
    %c0_i32_0 = arith.constant 0 : i32
    %c0_i32_1 = arith.constant 0 : i32
    return %c0_i32, %c0_i32_0 : i32, i32
  }
  func.func @transform_1(%arg0: i32, %arg1: memref<2x8xi32, #tpu.memory_space<smem>>) -> (i32, i32) {
    %c0_i32 = arith.constant 0 : i32
    %c0_i32_0 = arith.constant 0 : i32
    %c0_i32_1 = arith.constant 0 : i32
    return %c0_i32, %c0_i32_0 : i32, i32
  }
  func.func @transform_2(%arg0: i32, %arg1: memref<2x8xi32, #tpu.memory_space<smem>>) -> (i32, i32) {
    %c0_i32 = arith.constant 0 : i32
    %c0_i32_0 = arith.constant 0 : i32
    %c0_i32_1 = arith.constant 0 : i32
    return %c0_i32, %c0_i32_0 : i32, i32
  }
  func.func @transform_3(%arg0: i32, %arg1: memref<2x8xi32, #tpu.memory_space<smem>>) -> (i32, i32) {
    %c0_i32 = arith.constant 0 : i32
    %c0_i32_0 = arith.constant 0 : i32
    %c0_i32_1 = arith.constant 0 : i32
    return %c0_i32, %c0_i32_0 : i32, i32
  }
  func.func @transform_4(%arg0: i32, %arg1: memref<2x8xi32, #tpu.memory_space<smem>>) -> (i32, i32) {
    %c0_i32 = arith.constant 0 : i32
    %c0_i32_0 = arith.constant 0 : i32
    %c0_i32_1 = arith.constant 0 : i32
    return %c0_i32, %c0_i32_0 : i32, i32
  }
  func.func @transform_5(%arg0: i32, %arg1: memref<2x8xi32, #tpu.memory_space<smem>>) -> (i32, i32) {
    %c0_i32 = arith.constant 0 : i32
    %c0_i32_0 = arith.constant 0 : i32
    %c0_i32_1 = arith.constant 0 : i32
    return %c0_i32, %c0_i32_0 : i32, i32
  }
}

</mosaic_0001>

<bundles_post_ra>
// kernel: _lambda_.1
= control target key start
LH: loop header
LB: loop body
LE: loop exit
PB: predicated region body
PF: predicated region fallthrough
CT: control target
= control target key end

     0   :  { %s480_s24 = smov [#allocation4]   ;;  %s578_s0 = inlined_call_operand.hbm [shape: s32[2,8], index: 0, kind: input, shape index: {}]   ;;  %s579_s1 = inlined_call_operand.hbm [shape: f32[51,32], index: 1, kind: input, shape index: {}]   ;;  %s580_s2 = inlined_call_operand.hbm [shape: bf16[4,24], index: 2, kind: input, shape index: {}]   ;;  %s581_s3 = inlined_call_operand.hbm [shape: f32[4,128], index: 3, kind: input, shape index: {}]   ;;  %s582_s4 = inlined_call_operand.hbm [shape: bf16[8,12], index: 4, kind: input, shape index: {}]   ;;  %s583_s5 = inlined_call_operand.hbm [shape: f32[8,128], index: 5, kind: input, shape index: {}]   ;;  %s584_s6 = inlined_call_operand.vmem [shape: f32[8,2], index: 6, kind: output, shape index: {}]  }
   0x1   :  { %s12_s23 = sshll.u32 %s578_s0, 4  ;;  %s13_s23 = int_to_ptr.hbm [resolvable:$true] %s12_s23 }
   0x2   :  { %15 = dma.hbm_to_smem %s13_s23, 32, %s480_s24, [#allocation3] }
   0x3   :  { %472 = dma.done.wait [#allocation3], 32 }
   0x4   :  { %473 = vsyncadd [#allocation3], 4294967264 }
   0x5   :  { %18 = sfence }
   0x6   :  { %19 = vsyncpa [#allocation6], 0 }
   0x7   :  { %20 = vsyncpa [#allocation8], 0  ;;  %s40_s27 = sshll.u32 %s580_s2, 4  ;;  %s41_s27 = int_to_ptr.hbm [resolvable:$true] %s40_s27 }
   0x8   :  { %21 = vsyncpa [#allocation11], 0  ;;  %s481_s28 = smov [#allocation7]   ;;  %s62_s0 = sshll.u32 %s582_s4, 4  ;;  %s63_s0 = int_to_ptr.hbm [resolvable:$true] %s62_s0 }
   0x9   :  { %s42_s29 = sshll.u32 %s481_s28, 4  ;;  %s482_s8 = smov [#allocation10]   ;;  %s43_s29 = int_to_ptr.vmem [resolvable:$true] %s42_s29 }
   0xa   :  { %45 = dma.hbm_to_vmem [thread:$0]  %s41_s27, 32, %s43_s29, [#allocation8]  }
   0xb   :  { %s64_s9 = sshll.u32 %s482_s8, 4  ;;  %s26_s12 = sshll.u32 %s579_s1, 4  ;;  %s65_s9 = int_to_ptr.vmem [resolvable:$true] %s64_s9  ;;  %s27_s12 = int_to_ptr.hbm [resolvable:$true] %s26_s12 }
   0xc   :  { %67 = dma.hbm_to_vmem [thread:$0]  %s63_s0, 64, %s65_s9, [#allocation11]  }
   0xd   :  { %s483_s2 = smov [#allocation5]   ;;  %s51_s16 = sshll.u32 %s581_s3, 4  ;;  %s52_s16 = int_to_ptr.hbm [resolvable:$true] %s51_s16 }
   0xe   :  { %s28_s13 = sshll.u32 %s483_s2, 4  ;;  %s484_s17 = smov 128   ;;  %s29_s13 = int_to_ptr.vmem [resolvable:$true] %s28_s13 }
   0xf   :  { %s485_s4 = smov 8   ;;  %s486_s18 = smov [#allocation9]  }
  0x10   :  { %34 = dma.hbm_to_vmem [thread:$0]  %s27_s12, 896, %s29_s13, [#allocation6], %s484_s17, %s484_s17, %s485_s4  }
  0x11   :  { %s53_s19 = sshll.u32 %s486_s18, 4  ;;  %s73_s1 = sshll.u32 %s583_s5, 4  ;;  %s54_s19 = int_to_ptr.vmem [resolvable:$true] %s53_s19  ;;  %s74_s1 = int_to_ptr.hbm [resolvable:$true] %s73_s1 }
  0x12   :  { %56 = dma.hbm_to_vmem [thread:$0]  %s52_s16, 64, %s54_s19, [#allocation8]  }
  0x13   :  { %s487_s22 = smov [#allocation12]  }
  0x14   :  { %s75_s23 = sshll.u32 %s487_s22, 4  ;;  %s76_s23 = int_to_ptr.vmem [resolvable:$true] %s75_s23 }
  0x15   :  { %78 = dma.hbm_to_vmem [thread:$0]  %s74_s1, 128, %s76_s23, [#allocation11]  }
  0x16   :  { %474 = dma.done.wait [#allocation6], 896  }
  0x17   :  { %475 = vsyncadd [#allocation6], 4294966400 }
  0x18   :  { %476 = dma.done.wait [#allocation8], 96  }
  0x19   :  { %477 = vsyncadd [#allocation8], 4294967200 }
  0x1a   :  { %478 = dma.done.wait [#allocation11], 192  }
  0x1b   :  { %479 = vsyncadd [#allocation11], 4294967104  ;;  %s311_s3 = sld [smem:[#allocation4 + $0x80]]  ;;  %vm103_vm0 = vcmask 253952   ;;  %s488_s21 = smov 30   ;;  %v493_v19 = vmov 0  }
  0x1c   :  { %s312_s24 = sld [smem:[#allocation4 + $0x81]]  ;;  %s489_s22 = smov 29   ;;  %v191_v18 = vld [vmem:[#allocation9] sm:$0xf]  ;;  %337 = vset.pattern.permute.xlu2 %v493_v19  ;;  %338 = vset.pattern.permute.xlu1 %v493_v19  ;;  %vm171_vm1 = vcmask 244736   ;;  %vm201_vm2 = vcmask 1043456  }
  0x1d   :  { %s313_s25 = sld [smem:[#allocation4 + $0x82]]  ;;  %339 = vset.pattern.permute.xlu0 %v493_v19  ;;  %v188_v31 = vld [vmem:[#allocation7] sm:$0x3]  ;;  %vm197_vm3 = vcmask 195584   ;;  %v242_v37 = vld [vmem:[#allocation12] sm:$0xff]  ;;  %vm223_vm4 = vcmask 228352  }
  0x1e   :  { %s314_s26 = sld [smem:[#allocation4 + $0x83]]  ;;  %vm252_vm5 = vcmask 1045504   ;;  %v240_v49 = vld [vmem:[#allocation10] sm:$0xf]  ;;  %vm248_vm6 = vcmask 97280   ;;  %vm273_vm7 = vcmask 457952  }
  0x1f   :  { %s315_s27 = sld [smem:[#allocation4 + $0x84]]  ;;  %vm277_vm8 = vcmask 7168   ;;  %vm279_vm9 = vcmask 15360  }
  0x20   :  { %s316_s5 = sld [smem:[#allocation4 + $0x85]] }
  0x21   :  { %s317_s28 = sld [smem:[#allocation4 + $0x86]]  ;;  %s134_s29 = scalar_lea.vmem [#allocation5], %s311_s3 }
  0x22   :  { %v135_v0 = vld [vmem:[%s134_s29] sm:$0x1]  ;;  %s318_s30 = sld [smem:[#allocation4 + $0x87]]  ;;  %s138_s7 = scalar_lea.vmem [#allocation5], %s312_s24 }
  0x23   :  { %136 = vst.msk [vmem:[#allocation2 + $0x8] sm:$0x1] %vm103_vm0, %v135_v0  ;;  %v139_v1 = vld [vmem:[%s138_s7] sm:$0x1]  ;;  %s142_s0 = scalar_lea.vmem [#allocation5], %s313_s25  ;;  %s100_s2 = sld [smem:[#allocation4]] }
  0x24   :  { %140 = vst.msk [vmem:[#allocation2 + $0x9] sm:$0x1] %vm103_vm0, %v139_v1  ;;  %v143_v2 = vld [vmem:[%s142_s0] sm:$0x1]  ;;  %s146_s8 = scalar_lea.vmem [#allocation5], %s314_s26  ;;  %s304_s13 = sld [smem:[#allocation4 + $0x1]] }
  0x25   :  { %144 = vst.msk [vmem:[#allocation2 + $0xa] sm:$0x1] %vm103_vm0, %v143_v2  ;;  %v147_v3 = vld [vmem:[%s146_s8] sm:$0x1]  ;;  %s150_s9 = scalar_lea.vmem [#allocation5], %s315_s27  ;;  %s305_s14 = sld [smem:[#allocation4 + $0x2]] }
  0x26   :  { %148 = vst.msk [vmem:[#allocation2 + $0xb] sm:$0x1] %vm103_vm0, %v147_v3  ;;  %v151_v4 = vld [vmem:[%s150_s9] sm:$0x1]  ;;  %s154_s10 = scalar_lea.vmem [#allocation5], %s316_s5  ;;  %s306_s15 = sld [smem:[#allocation4 + $0x3]] }
  0x27   :  { %152 = vst.msk [vmem:[#allocation2 + $0xc] sm:$0x1] %vm103_vm0, %v151_v4  ;;  %v155_v5 = vld [vmem:[%s154_s10] sm:$0x1]  ;;  %s158_s11 = scalar_lea.vmem [#allocation5], %s317_s28  ;;  %s307_s16 = sld [smem:[#allocation4 + $0x4]] }
  0x28   :  { %156 = vst.msk [vmem:[#allocation2 + $0xd] sm:$0x1] %vm103_vm0, %v155_v5  ;;  %v159_v6 = vld [vmem:[%s158_s11] sm:$0x1]  ;;  %s162_s12 = scalar_lea.vmem [#allocation5], %s318_s30  ;;  %s308_s17 = sld [smem:[#allocation4 + $0x5]] }
  0x29   :  { %160 = vst.msk [vmem:[#allocation2 + $0xe] sm:$0x1] %vm103_vm0, %v159_v6  ;;  %v163_v7 = vld [vmem:[%s162_s12] sm:$0x1]  ;;  %s309_s4 = sld [smem:[#allocation4 + $0x6]]  ;;  %s101_s18 = scalar_lea.vmem [#allocation5], %s100_s2 }
  0x2a   :  { %164 = vst.msk [vmem:[#allocation2 + $0xf] sm:$0x1] %vm103_vm0, %v163_v7  ;;  %v102_v8 = vld [vmem:[%s101_s18] sm:$0x1]  ;;  %s310_s19 = sld [smem:[#allocation4 + $0x7]]  ;;  %s106_s20 = scalar_lea.vmem [#allocation5], %s304_s13 }
  0x2b   :  { %104 = vst.msk [vmem:[#allocation2] sm:$0x1] %vm103_vm0, %v102_v8  ;;  %v107_v10 = vld [vmem:[%s106_s20] sm:$0x1]  ;;  %s110_s1 = scalar_lea.vmem [#allocation5], %s305_s14  ;;  %s490_s27 = smov 126  }
  0x2c   :  { %108 = vst.msk [vmem:[#allocation2 + $0x1] sm:$0x1] %vm103_vm0, %v107_v10  ;;  %v111_v11 = vld [vmem:[%s110_s1] sm:$0x1]  ;;  %s114_s23 = scalar_lea.vmem [#allocation5], %s306_s15  ;;  %s491_s5 = smov 127  }
  0x2d   :  { %112 = vst.msk [vmem:[#allocation2 + $0x2] sm:$0x1] %vm103_vm0, %v111_v11  ;;  %v115_v12 = vld [vmem:[%s114_s23] sm:$0x1]  ;;  %s118_s3 = scalar_lea.vmem [#allocation5], %s307_s16  ;;  %s492_s28 = smov 28  }
  0x2e   :  { %116 = vst.msk [vmem:[#allocation2 + $0x3] sm:$0x1] %vm103_vm0, %v115_v12  ;;  %v119_v13 = vld [vmem:[%s118_s3] sm:$0x1]  ;;  %s122_s24 = scalar_lea.vmem [#allocation5], %s308_s17  ;;  %s494_s29 = smov 125  }
  0x2f   :  { %120 = vst.msk [vmem:[#allocation2 + $0x4] sm:$0x1] %vm103_vm0, %v119_v13  ;;  %v123_v14 = vld [vmem:[%s122_s24] sm:$0x1]  ;;  %s126_s25 = scalar_lea.vmem [#allocation5], %s309_s4  ;;  %s495_s30 = smov 124  }
  0x30   :  { %124 = vst.msk [vmem:[#allocation2 + $0x5] sm:$0x1] %vm103_vm0, %v123_v14  ;;  %v127_v15 = vld [vmem:[%s126_s25] sm:$0x1]  ;;  %s130_s26 = scalar_lea.vmem [#allocation5], %s310_s19 }
  0x31   :  { %v166_v9 = vld [vmem:[#allocation2 + $0x8] sm:$0xff]  ;;  %128 = vst.msk [vmem:[#allocation2 + $0x6] sm:$0x1] %vm103_vm0, %v127_v15  ;;  %v131_v16 = vld [vmem:[%s130_s26] sm:$0x1] }
  0x32   :  { %168 = vrot.lane.b32.xlu1 %v166_v9, %s488_s21  ;;  %177 = vrot.lane.b32.xlu2 %v166_v9, %s489_s22  ;;  %132 = vst.msk [vmem:[#allocation2 + $0x7] sm:$0x1] %vm103_vm0, %v131_v16 }
  0x39   :  { %v165_v17 = vld [vmem:[#allocation2] sm:$0xff] }
  0x3a   :  { %181 = vrot.lane.b32.xlu0 %v165_v17, %s490_s27  ;;  %174 = vrot.lane.b32.xlu1 %v165_v17, %s491_s5 }
  0x3b   :  { %194 = vperm.xlu2 %337, %v191_v18  }
  0x42   :  { %184 = vrot.lane.b32.xlu0 %v166_v9, %s492_s28 }
  0x8c   :  { %v178_v23 = vpop.permute.xlu2 %177 }
  0x95   :  { %v195_v32 = vpop.permute.xlu2 %194 }
  0xa4   :  { %v169_v20 = vpop.permute.xlu1 %168 }
  0xa5   :  { %v172_v29 = vsel %vm171_vm1, %v165_v17, %v169_v20 }
  0xac   :  { %v182_v21 = vpop.permute.xlu0 %181  ;;  %v175_v24 = vpop.permute.xlu1 %174 }
  0xad   :  { %v180_v27 = vsel %vm171_vm1, %v175_v24, %v178_v23 }
  0xae   :  { %v189_v30 = vpack.c.bf16 %v180_v27, %v172_v29 }
  0xb4   :  { %v185_v22 = vpop.permute.xlu0 %184 }
  0xb5   :  { %v187_v25 = vsel %vm171_vm1, %v182_v21, %v185_v22 }
  0xb6   :  { %v190_v26 = vpack.c.bf16 %v187_v25, %v187_v25 }
  0xb8   :  { %v203_v28 = vsel %vm201_vm2, %v190_v26, 0 }
  0xb9   :  { %211 = vmatpush.bf16.msra.mxu0 %v203_v28 }
  0xbd   :  { %212 = vmatpush.bf16.msra.mxu0 %v189_v30 }
  0xc0   :  { %319 = vmatmul.msk.bf16.vlgmr.msra.gmra.mxu0 %vm197_vm3, %v188_v31 }
 0x13d   :  { %v214_v33 = vpop.f32.mrf.mxu0 }
 0x13e   :  { %v215_v34 = vadd.f32 %v214_v33, %v195_v32 }
 0x140   :  { %v218_v35 = vmax.f32 %v215_v34, 0.0 }
 0x142   :  { %220 = vrot.lane.b32.xlu2 %v218_v35, %s490_s27  ;;  %228 = vrot.lane.b32.xlu1 %v218_v35, %s494_s29 }
 0x143   :  { %225 = vrot.lane.b32.xlu0 %v218_v35, %s491_s5 }
 0x145   :  { %v216_v36 = vpop.f32.mrf.mxu0 }
 0x14a   :  { %245 = vperm.xlu1 %338, %v242_v37  }
 0x14b   :  { %232 = vrot.lane.b32.xlu0 %v218_v35, %s495_s30 }
 0x19c   :  { %v221_v41 = vpop.permute.xlu2 %220 }
 0x19d   :  { %v224_v43 = vsel %vm223_vm4, %v218_v35, %v221_v41 }
 0x1b4   :  { %v229_v38 = vpop.permute.xlu1 %228 }
 0x1b5   :  { %v226_v39 = vpop.permute.xlu0 %225 }
 0x1b6   :  { %v231_v40 = vsel %vm223_vm4, %v226_v39, %v229_v38 }
 0x1b7   :  { %v237_v42 = vrot.slane %v231_v40, 4 }
 0x1b9   :  { %v239_v46 = vsel %vm201_vm2, %v224_v43, %v237_v42 }
 0x1bc   :  { %v246_v50 = vpop.permute.xlu1 %245 }
 0x1bd   :  { %v233_v44 = vpop.permute.xlu0 %232 }
 0x1be   :  { %v235_v45 = vsel %vm223_vm4, %v221_v41, %v233_v44 }
 0x1bf   :  { %v241_v47 = vpack.c.bf16 %v235_v45, %v239_v46 }
 0x1c1   :  { %v254_v48 = vsel %vm252_vm5, %v241_v47, 0 }
 0x1c2   :  { %263 = vmatpush.bf16.msra.mxu1 %v254_v48 }
 0x1c5   :  { %320 = vmatmul.msk.bf16.vlgmr.msra.gmra.mxu1 %vm248_vm6, %v240_v49 }
 0x242   :  { %v265_v51 = vpop.f32.mrf.mxu1 }
 0x243   :  { %v266_v52 = vadd.f32 %v265_v51, %v246_v50 }
 0x245   :  { %v269_v53 = vmax.f32 %v266_v52, 0.0 }
 0x247   :  { %v274_v54 = vsel %vm273_vm7, %v269_v53, -inf  ;;  %v270_v55 = vsel %vm223_vm4, %v269_v53, -inf }
 0x248   :  { %275 = vmax.xlane.f32.xlu0 %v274_v54  ;;  %271 = vmax.xlane.f32.xlu2 %v270_v55 }
 0x24a   :  { %v267_v56 = vpop.f32.mrf.mxu1 }
 0x2bb   :  { %v276_v57 = vpop.xlane.xlu0 %275  ;;  %v272_v58 = vpop.xlane.xlu2 %271 }
 0x2bc   :  { %v278_v59 = vsel %vm277_vm8, %v272_v58, %v276_v57 }
 0x2bd   :  { %280 = vst.msk [vmem:[%s584_s6] sm:$0xff] %vm279_vm9, %v278_v59 }
 0x2be   :  { %285 = vsyncpa [#allocation6], 1 }
 0x2bf   :  { %286 = vsyncpa [#allocation8], 1 }
 0x2c0   :  { %287 = vsyncpa [#allocation11], 1 }

</bundles_post_ra>
